<compile_context>
chip_gen: v7x
topology: tpu7x:2x2x1
jax: 0.10.0
libtpu: 0.0.40
codegen_flags: <defaults>
</compile_context>

<pallas_src>
import functools

import jax
import jax.numpy as jnp
from jax.experimental import pallas as pl
from jax.experimental.pallas import tpu as pltpu

_EPS = 1e-5
_MIN_GRID_STEPS = 8              # >= 2 steps per TensorCore on v7x + pipelining
_MAX_IN_BUFFER_BYTES = 8 << 20   # per-input-buffer byte target


def _tpu_generation():
    """Best-effort TPU generation (5, 6, 7, ...); defaults to 6."""
    try:
        kind = jax.devices()[0].device_kind.lower()
        for g in (7, 6, 5, 4, 3, 2):
            if f"v{g}" in kind:
                return g
    except Exception:
        pass
    return 6


def _vmem_capacity_bytes(gen):
    """Per-TensorCore VMEM capacity; prefers the trace-time HW query."""
    try:
        cap = int(pltpu.get_tpu_info().vmem_capacity_bytes)
        if cap > 0:
            return cap
    except Exception:
        pass
    # Fallback: v5e/v6e have 128 MiB per TC, v7x has 64 MiB; be conservative
    # for unknown generations.
    return (128 << 20) if gen in (5, 6) else (64 << 20)


def _choose_tile_rows(R, H, dtype_bytes, vmem_budget):
    # Per-row VMEM footprint of one grid step:
    #   input  tile, double-buffered : 2 * H * dtype_bytes
    #   output tile, double-buffered : 2 * H * dtype_bytes
    #   live f32 compute temporaries : ~3 * H * 4   (x, x - mean, y)
    per_row = 4 * H * dtype_bytes + 12 * H
    tile = vmem_budget // max(per_row, 1)

    # Byte target per input buffer (keeps per-step overhead << DMA time,
    # without an arbitrary row cap that under-sizes small-H tiles).
    tile = min(tile, _MAX_IN_BUFFER_BYTES // max(H * dtype_bytes, 1))

    # Keep at least _MIN_GRID_STEPS grid steps when the problem is big enough,
    # so the pipeline double-buffers and v7x's two TensorCores both get work.
    r_rounded = ((R + 7) // 8) * 8
    if r_rounded > _MIN_GRID_STEPS * 8:
        tile = min(tile, pl.cdiv(r_rounded, _MIN_GRID_STEPS))

    tile = min(tile, max(8, r_rounded))      # never bigger than the problem
    tile = max(8, (int(tile) // 8) * 8)      # multiple of 8 sublanes
    return tile


def _ln_body(x_ref, w_ref, b_ref, o_ref, *, bf16_tail):
    # Stats always accumulate in f32: two-pass centered variance matches
    # F.layer_norm and avoids E[x^2]-mean^2 cancellation (var >= 0 always).
    x = x_ref[...].astype(jnp.float32)
    inv_h = 1.0 / x.shape[-1]
    mean = jnp.sum(x, axis=-1, keepdims=True) * inv_h
    xc = x - mean
    var = jnp.sum(xc * xc, axis=-1, keepdims=True) * inv_h
    inv = jax.lax.rsqrt(var + _EPS)
    # TODO(synk): if a v5e bundle profile ever shows the XLU slot binding,
    # offload the two row-sums to the idle MXU via jnp.dot(x, ones((H, 1))).
    if bf16_tail:
        # v6e/v7x have a bf16 VALU: do the scale/bias tail in the output dtype
        # to halve VPU element-op count; stats/rsqrt stay f32.
        y = (xc * inv).astype(o_ref.dtype) * w_ref[...].astype(o_ref.dtype)
        if b_ref is not None:
            y = y + b_ref[...].astype(o_ref.dtype)
        o_ref[...] = y
    else:
        y = xc * inv * w_ref[...].astype(jnp.float32)
        if b_ref is not None:
            y = y + b_ref[...].astype(jnp.float32)
        o_ref[...] = y.astype(o_ref.dtype)


def _layernorm_kernel_bias(x_ref, w_ref, b_ref, o_ref, *, bf16_tail):
    _ln_body(x_ref, w_ref, b_ref, o_ref, bf16_tail=bf16_tail)


def _layernorm_kernel_nobias(x_ref, w_ref, o_ref, *, bf16_tail):
    _ln_body(x_ref, w_ref, None, o_ref, bf16_tail=bf16_tail)


def layer_norm_pallas(x, weight, bias=None, *, tile_rows=None):
    """x: (..., H); weight: (H,); bias: (H,) or None. eps = 1e-5."""
    orig_shape = x.shape
    H = orig_shape[-1]
    x2 = x.reshape(-1, H)
    R = x2.shape[0]

    gen = _tpu_generation()
    vmem_cap = _vmem_capacity_bytes(gen)
    vmem_budget = vmem_cap // 4          # tile-sizing budget
    vmem_limit = vmem_cap // 2           # scoped VMEM limit handed to Mosaic

    dtype_bytes = jnp.dtype(x.dtype).itemsize
    if tile_rows is None:
        tile_rows = _choose_tile_rows(R, H, dtype_bytes, vmem_budget)

    grid = (pl.cdiv(R, tile_rows),)

    w2 = weight.reshape(1, H)

    # NOTE: keep the output blocked so the garbage rows of a partial last
    # block are masked on store. Default double-buffering; pl.Buffered(3)
    # only if profiling ever shows exposed DMA at small tiles.
    row_spec = pl.BlockSpec((tile_rows, H), lambda i: (i, 0))
    param_spec = pl.BlockSpec((1, H), lambda i: (0, 0))

    bf16_tail = (jnp.dtype(x.dtype) == jnp.dtype(jnp.bfloat16)) and gen >= 6

    cost = pl.CostEstimate(
        flops=8 * R * H,
        transcendentals=R,
        bytes_accessed=2 * R * H * dtype_bytes + 2 * H * dtype_bytes,
    )
    cparams = pltpu.CompilerParams(
        dimension_semantics=("parallel",),
        vmem_limit_bytes=vmem_limit,
    )

    if bias is None:
        kernel = functools.partial(_layernorm_kernel_nobias, bf16_tail=bf16_tail)
        in_specs = [row_spec, param_spec]
        operands = (x2, w2)
    else:
        kernel = functools.partial(_layernorm_kernel_bias, bf16_tail=bf16_tail)
        in_specs = [row_spec, param_spec, param_spec]
        operands = (x2, w2, bias.reshape(1, H))

    out = pl.pallas_call(
        kernel,
        out_shape=jax.ShapeDtypeStruct((R, H), x.dtype),
        grid_spec=pltpu.PrefetchScalarGridSpec(
            num_scalar_prefetch=0,
            grid=grid,
            in_specs=in_specs,
            out_specs=row_spec,
        ),
        compiler_params=cparams,
        cost_estimate=cost,
    )(*operands)

    return out.reshape(orig_shape)


if __name__ == "__main__":
    key = jax.random.PRNGKey(0)
    B, T, H = 2, 8, 32  # batch, seq, hidden

    x = jax.random.normal(key, (B, T, H), dtype=jnp.float32)

    # Deterministic parameter init per nn.Module __init__: weight=ones, bias=zeros.
    weight = jnp.ones((H,), dtype=jnp.float32)
    bias = jnp.zeros((H,), dtype=jnp.float32)  # module constructed with bias=True

    # Reference in plain JAX (matches F.layer_norm semantics).
    mean = jnp.mean(x, axis=-1, keepdims=True)
    var = jnp.mean((x - mean) ** 2, axis=-1, keepdims=True)
    ref = (x - mean) / jnp.sqrt(var + _EPS) * weight + bias

    # With bias.
    y = layer_norm_pallas(x, weight, bias)
    jax.block_until_ready(y)
    assert jnp.allclose(y, ref, atol=1e-5, rtol=1e-5), "mismatch vs reference (bias)"

    # Bias-free path (module constructed with bias=False).
    y_nb = layer_norm_pallas(x, weight, None)
    jax.block_until_ready(y_nb)
    ref_nb = (x - mean) / jnp.sqrt(var + _EPS) * weight
    assert jnp.allclose(y_nb, ref_nb, atol=1e-5, rtol=1e-5), "mismatch vs reference (no bias)"

    # bf16 path (exercises the low-precision elementwise tail on v6e/v7x).
    xb = x.astype(jnp.bfloat16)
    xb32 = xb.astype(jnp.float32)
    mean_b = jnp.mean(xb32, axis=-1, keepdims=True)
    var_b = jnp.mean((xb32 - mean_b) ** 2, axis=-1, keepdims=True)
    ref_b = (xb32 - mean_b) / jnp.sqrt(var_b + _EPS)
    yb = layer_norm_pallas(xb, weight.astype(jnp.bfloat16), bias.astype(jnp.bfloat16))
    jax.block_until_ready(yb)
    assert jnp.allclose(yb.astype(jnp.float32), ref_b, atol=2e-2, rtol=2e-2), \
        "mismatch vs reference (bf16)"

    print("KERNEL_OK")
</pallas_src>

<mosaic_0001>
module attributes {stable_mosaic.version = 11 : i64} {
  func.func @_layernorm_kernel_bias(%arg0: i32, %arg1: memref<16x32xf32, #tpu.memory_space<vmem>>, %arg2: memref<1x32xf32, #tpu.memory_space<vmem>>, %arg3: memref<1x32xf32, #tpu.memory_space<vmem>>, %arg4: memref<16x32xf32, #tpu.memory_space<vmem>>) attributes {dimension_semantics = [#tpu.dimension_semantics<parallel>], iteration_bounds = array<i64: 1>, scalar_prefetch = 0 : i64, scratch_operands = 0 : i64, tpu.core_type = #tpu.core_type<tc>, window_params = [{transform_indices = @transform_0, window_bounds = array<i64: 16, 32>}, {pipeline_mode = #tpu.pipeline_mode<synchronous>, transform_indices = @transform_1, window_bounds = array<i64: 1, 32>}, {pipeline_mode = #tpu.pipeline_mode<synchronous>, transform_indices = @transform_2, window_bounds = array<i64: 1, 32>}, {transform_indices = @transform_3, window_bounds = array<i64: 16, 32>}]} {
    %c0 = arith.constant 0 : index
    %c0_0 = arith.constant 0 : index
    %0 = vector.load %arg1[%c0, %c0_0] : memref<16x32xf32, #tpu.memory_space<vmem>>, vector<16x32xf32>
    %cst = arith.constant dense<0.000000e+00> : vector<16xf32>
    %1 = vector.multi_reduction <add>, %0, %cst [1] : vector<16x32xf32> to vector<16xf32>
    %2 = vector.shape_cast %1 : vector<16xf32> to vector<16x1xf32>
    %cst_1 = arith.constant 3.125000e-02 : f32
    %3 = vector.broadcast %cst_1 : f32 to vector<16x1xf32>
    %4 = arith.mulf %2, %3 : vector<16x1xf32>
    %5 = vector.broadcast %4 : vector<16x1xf32> to vector<16x32xf32>
    %6 = arith.subf %0, %5 : vector<16x32xf32>
    %7 = arith.mulf %6, %6 : vector<16x32xf32>
    %cst_2 = arith.constant dense<0.000000e+00> : vector<16xf32>
    %8 = vector.multi_reduction <add>, %7, %cst_2 [1] : vector<16x32xf32> to vector<16xf32>
    %9 = vector.shape_cast %8 : vector<16xf32> to vector<16x1xf32>
    %cst_3 = arith.constant 3.125000e-02 : f32
    %10 = vector.broadcast %cst_3 : f32 to vector<16x1xf32>
    %11 = arith.mulf %9, %10 : vector<16x1xf32>
    %cst_4 = arith.constant 9.99999974E-6 : f32
    %12 = vector.broadcast %cst_4 : f32 to vector<16x1xf32>
    %13 = arith.addf %11, %12 : vector<16x1xf32>
    %14 = math.rsqrt %13 : vector<16x1xf32>
    %15 = vector.broadcast %14 : vector<16x1xf32> to vector<16x32xf32>
    %16 = arith.mulf %6, %15 : vector<16x32xf32>
    %c0_5 = arith.constant 0 : index
    %c0_6 = arith.constant 0 : index
    %17 = vector.load %arg2[%c0_5, %c0_6] : memref<1x32xf32, #tpu.memory_space<vmem>>, vector<1x32xf32>
    %18 = vector.broadcast %17 : vector<1x32xf32> to vector<16x32xf32>
    %19 = arith.mulf %16, %18 : vector<16x32xf32>
    %c0_7 = arith.constant 0 : index
    %c0_8 = arith.constant 0 : index
    %20 = vector.load %arg3[%c0_7, %c0_8] : memref<1x32xf32, #tpu.memory_space<vmem>>, vector<1x32xf32>
    %21 = vector.broadcast %20 : vector<1x32xf32> to vector<16x32xf32>
    %22 = arith.addf %19, %21 : vector<16x32xf32>
    %c0_9 = arith.constant 0 : index
    %c0_10 = arith.constant 0 : index
    %23 = vector.load %arg4[%c0_9, %c0_10] : memref<16x32xf32, #tpu.memory_space<vmem>>, vector<16x32xf32>
    tpu.vector_store %arg4[%c0_9, %c0_10], %22 {strides = array<i32>} : memref<16x32xf32, #tpu.memory_space<vmem>>, vector<16x32xf32>,
    return
  }
  func.func @transform_0(%arg0: i32) -> (i32, i32) {
    %c0_i32 = arith.constant 0 : i32
    %c0_i32_0 = arith.constant 0 : i32
    return %arg0, %c0_i32 : i32, i32
  }
  func.func @transform_1(%arg0: i32) -> (i32, i32) {
    %c0_i32 = arith.constant 0 : i32
    %c0_i32_0 = arith.constant 0 : i32
    %c0_i32_1 = arith.constant 0 : i32
    return %c0_i32, %c0_i32_0 : i32, i32
  }
  func.func @transform_2(%arg0: i32) -> (i32, i32) {
    %c0_i32 = arith.constant 0 : i32
    %c0_i32_0 = arith.constant 0 : i32
    %c0_i32_1 = arith.constant 0 : i32
    return %c0_i32, %c0_i32_0 : i32, i32
  }
  func.func @transform_3(%arg0: i32) -> (i32, i32) {
    %c0_i32 = arith.constant 0 : i32
    %c0_i32_0 = arith.constant 0 : i32
    return %arg0, %c0_i32 : i32, i32
  }
}

</mosaic_0001>

<bundles_post_ra>
// kernel: tpu_custom_call.1
= control target key start
LH: loop header
LB: loop body
LE: loop exit
PB: predicated region body
PF: predicated region fallthrough
CT: control target
= control target key end

     0   :  { %8 = vsyncpa [#allocation3], 0  ;;  %s318_s0 = inlined_call_operand.hbm [shape: f32[16,32], index: 0, kind: input, shape index: {}]   ;;  %s319_s1 = inlined_call_operand.hbm [shape: f32[1,32], index: 1, kind: input, shape index: {}]   ;;  %s320_s2 = inlined_call_operand.hbm [shape: f32[1,32], index: 2, kind: input, shape index: {}]   ;;  %s321_s3 = inlined_call_operand.hbm [shape: f32[16,32], index: 3, kind: output, shape index: {}]  }
   0x1   :  { %9 = vsyncpa [#allocation6], 0 }
   0x2   :  { %10 = vsyncpa [#allocation4], 0  ;;  %s225_s12 = smov [#allocation5]   ;;  %s226_s14 = smov [#allocation2]  }
   0x3   :  { %s29_s13 = sshll.u32 %s225_s12, 4  ;;  %s16_s15 = sshll.u32 %s226_s14, 4  ;;  %s30_s13 = int_to_ptr.vmem [resolvable:$true] %s29_s13  ;;  %s251_s15 = int_to_ptr.vmem [resolvable:$true] %s16_s15 }
   0x4   :  { %s131_s18 = scalar_lea.hbm %s319_s1, 16 }
   0x5   :  { %p132_p0 = scmp.ne.s32.totalorder %s319_s1, %s131_s18  ;;  %p135_p1 = scmp.lt.u32.totalorder %s131_s18, %s319_s1 }
   0x7   :  { %p137_p2 = pnand %p135_p1, %p132_p0 }
   0x9   :  { %140 = shalt.err (!%p137_p2)
}
   0xa   :  { %s141_s23 = scalar_lea.vmem %s30_s13, 16  ;;  %s145_s24 = scalar_lea.vmem %s30_s13, 32 }
   0xb   :  { %p142_p3 = scmp.ne.s32.totalorder %s30_s13, %s141_s23  ;;  %p146_p4 = scmp.lt.s32.totalorder %s30_s13, %s30_s13 }
   0xc   :  { %p147_p5 = scmp.lt.s32.totalorder %s145_s24, %s141_s23 }
   0xe   :  { %p148_p6 = por %p147_p5, %p146_p4 }
  0x10   :  { %p149_p7 = pnand %p148_p6, %p142_p3 }
  0x12   :  { %152 = shalt.err (!%p149_p7)
}
  0x13   :  { %32 = dma.hbm_to_vmem [thread:$0]  %s319_s1, 16, %s30_s13, [#allocation6]  }
  0x14   :  { %s153_s29 = scalar_lea.hbm %s318_s0, 256 }
  0x15   :  { %p154_p8 = scmp.ne.s32.totalorder %s318_s0, %s153_s29  ;;  %p157_p9 = scmp.lt.u32.totalorder %s153_s29, %s318_s0 }
  0x17   :  { %p159_p10 = pnand %p157_p9, %p154_p8 }
  0x19   :  { %162 = shalt.err (!%p159_p10)
}
  0x1a   :  { %s163_s7 = scalar_lea.vmem %s251_s15, 256  ;;  %p168_p12 = scmp.lt.s32.totalorder %s251_s15, %s251_s15 }
  0x1b   :  { %p164_p11 = scmp.ne.s32.totalorder %s251_s15, %s163_s7  ;;  %p169_p13 = scmp.lt.s32.totalorder %s163_s7, %s163_s7 }
  0x1d   :  { %p170_p0 = por %p169_p13, %p168_p12 }
  0x1f   :  { %p171_p1 = pnand %p170_p0, %p164_p11 }
  0x21   :  { %174 = shalt.err (!%p171_p1)
}
  0x22   :  { %s227_s1 = smov 128   ;;  %s228_s8 = smov 8  }
  0x23   :  { %22 = dma.hbm_to_vmem [thread:$0]  %s318_s0, 256, %s251_s15, [#allocation3], %s227_s1, %s227_s1, %s228_s8  }
  0x24   :  { %s229_s11 = smov [#allocation7]   ;;  %s175_s16 = scalar_lea.hbm %s320_s2, 16 }
  0x25   :  { %s39_s12 = sshll.u32 %s229_s11, 4  ;;  %p176_p2 = scmp.ne.s32.totalorder %s320_s2, %s175_s16  ;;  %s40_s12 = int_to_ptr.vmem [resolvable:$true] %s39_s12 }
  0x26   :  { %p179_p3 = scmp.lt.u32.totalorder %s175_s16, %s320_s2 }
  0x28   :  { %p181_p4 = pnand %p179_p3, %p176_p2 }
  0x2a   :  { %184 = shalt.err (!%p181_p4)
}
  0x2b   :  { %s185_s21 = scalar_lea.vmem %s40_s12, 16  ;;  %s189_s0 = scalar_lea.vmem %s40_s12, 32 }
  0x2c   :  { %p186_p5 = scmp.ne.s32.totalorder %s40_s12, %s185_s21  ;;  %p190_p6 = scmp.lt.s32.totalorder %s40_s12, %s40_s12 }
  0x2d   :  { %p191_p7 = scmp.lt.s32.totalorder %s189_s0, %s185_s21 }
  0x2f   :  { %p192_p8 = por %p191_p7, %p190_p6 }
  0x31   :  { %p193_p9 = pnand %p192_p8, %p186_p5 }
  0x33   :  { %196 = shalt.err (!%p193_p9)
}
  0x34   :  { %42 = dma.hbm_to_vmem [thread:$0]  %s320_s2, 16, %s40_s12, [#allocation6]  }
  0x35   :  { %219 = dma.done.wait [#allocation3], 256  }
  0x36   :  { %220 = vsyncadd [#allocation3], 4294967040 }
  0x37   :  { %221 = dma.done.wait [#allocation6], 32  }
  0x38   :  { %222 = vsyncadd [#allocation6], 4294967264  ;;  %vm54_vm0 = vcmask 261120   ;;  %v52_v0 = vld [vmem:[#allocation2] sm:$0xff]  ;;  %v53_v1 = vld [vmem:[#allocation2 + $0x8] sm:$0xff]  ;;  %s230_s2 = smov [#allocation8]  }
  0x39   :  { %v55_v2 = vsel %vm54_vm0, %v52_v0, 0.0  ;;  %v58_v3 = vsel %vm54_vm0, %v53_v1, 0.0  ;;  %v119_v21 = vld [vmem:[#allocation5] ss:$0 sm:$0xff]  ;;  %v120_v23 = vld [vmem:[#allocation7] ss:$0 sm:$0xff] }
  0x3a   :  { %56 = vadd.xlane.f32.xlu0 %v55_v2  ;;  %s106_s23 = sshll.u32 %s230_s2, 4  ;;  %s107_s23 = int_to_ptr.vmem [resolvable:$true] %s106_s23 }
  0x3b   :  { %s197_s24 = scalar_lea.vmem %s107_s23, 256  ;;  %p202_p11 = scmp.lt.s32.totalorder %s107_s23, %s107_s23 }
  0x3c   :  { %p198_p10 = scmp.ne.s32.totalorder %s107_s23, %s197_s24  ;;  %p203_p12 = scmp.lt.s32.totalorder %s197_s24, %s197_s24 }
  0x3e   :  { %59 = vadd.xlane.f32.xlu0 %v58_v3  ;;  %p204_p13 = por %p203_p12, %p202_p11 }
  0x40   :  { %p205_p0 = pnand %p204_p13, %p198_p10 }
  0xc7   :  { %v57_v4 = vpop.xlane.xlu0 %56 }
  0xc8   :  { %v61_v5 = vmul.f32 0.03125, %v57_v4 }
  0xca   :  { %v63_v6 = vsub.f32 %v52_v0, %v61_v5 }
  0xcb   :  { %v60_v7 = vpop.xlane.xlu0 %59 }
  0xcc   :  { %v62_v8 = vmul.f32 0.03125, %v60_v7  ;;  %v65_v9 = vmul.f32 %v63_v6, %v63_v6 }
  0xce   :  { %v64_v10 = vsub.f32 %v53_v1, %v62_v8  ;;  %v67_v11 = vsel %vm54_vm0, %v65_v9, 0.0 }
  0xcf   :  { %68 = vadd.xlane.f32.xlu1 %v67_v11 }
  0xd0   :  { %v66_v12 = vmul.f32 %v64_v10, %v64_v10 }
  0xd2   :  { %v70_v13 = vsel %vm54_vm0, %v66_v12, 0.0 }
  0xd3   :  { %71 = vadd.xlane.f32.xlu1 %v70_v13 }
 0x15c   :  { %v69_v14 = vpop.xlane.xlu1 %68 }
 0x15d   :  { %v73_v15 = vmul.f32 0.03125, %v69_v14 }
 0x15f   :  { %v75_v16 = vadd.f32 1e-05, %v73_v15 }
 0x160   :  { %v72_v17 = vpop.xlane.xlu1 %71 }
 0x161   :  { %127 = vrsqrt.f32 %v75_v16  ;;  %v74_v18 = vmul.f32 0.03125, %v72_v17 }
 0x163   :  { %v76_v19 = vadd.f32 1e-05, %v74_v18 }
 0x165   :  { %129 = vrsqrt.f32 %v76_v19 }
 0x16b   :  { %v128_v20 = vpop.eup %127 }
 0x16c   :  { %v79_v22 = vmul.f32 %v128_v20, %v63_v6 }
 0x16e   :  { %v88_v24 = vmul.f32 %v119_v21, %v79_v22 }
 0x16f   :  { %v130_v25 = vpop.eup %129 }
 0x170   :  { %v80_v26 = vmul.f32 %v130_v25, %v64_v10  ;;  %v97_v27 = vadd.f32 %v120_v23, %v88_v24 }
 0x172   :  { %v89_v28 = vmul.f32 %v119_v21, %v80_v26  ;;  %99 = vst.msk [vmem:[#allocation8] sm:$0xff] %vm54_vm0, %v97_v27 }
 0x174   :  { %v98_v29 = vadd.f32 %v120_v23, %v89_v28 }
 0x176   :  { %100 = vst.msk [vmem:[#allocation8 + $0x8] sm:$0xff] %vm54_vm0, %v98_v29 }
 0x177   :  { %208 = shalt.err (!%p205_p0)
}
 0x178   :  { %s209_s27 = scalar_lea.hbm %s321_s3, 256 }
 0x179   :  { %p210_p1 = scmp.ne.s32.totalorder %s321_s3, %s209_s27  ;;  %p213_p2 = scmp.lt.u32.totalorder %s209_s27, %s321_s3 }
 0x17b   :  { %p215_p3 = pnand %p213_p2, %p210_p1 }
 0x17d   :  { %218 = shalt.err (!%p215_p3)
}
 0x17e   :  { %112 = dma.vmem_to_hbm [thread:$0]  %s107_s23, 256, %s321_s3, [#allocation4], %s227_s1, %s227_s1, %s228_s8  }
 0x17f   :  { %223 = dma.done.wait [#allocation4], 256  }
 0x180   :  { %224 = vsyncadd [#allocation4], 4294967040 }
 0x181   :  { %116 = vsyncpa [#allocation3], 1 }
 0x182   :  { %117 = vsyncpa [#allocation6], 1 }
 0x183   :  { %118 = vsyncpa [#allocation4], 1 }

</bundles_post_ra>
